<compile_context>
chip_gen: v7x
topology: tpu7x:2x2x1
jax: 0.10.0
libtpu: 0.0.40
codegen_flags: <defaults>
</compile_context>

<pallas_src>
import functools

import jax
import jax.numpy as jnp
from jax.experimental import pallas as pl
from jax.experimental.pallas import tpu as pltpu


def _dino_loss_kernel(t_ref, s_ref, c_ref, loss_ref, center_ref, *,
                      inv_teacher_temp, inv_student_temp,
                      loss_scale, center_scale, n_diag):
    step = pl.program_id(1)                    # inner (accumulation) grid axis

    @pl.when(step == 0)
    def _():
        loss_ref[...] = jnp.zeros_like(loss_ref)
        center_ref[...] = jnp.zeros_like(center_ref)

    c = c_ref[...].astype(jnp.float32)         # (1, D)
    T = t_ref.shape[0]
    S = s_ref.shape[0]

    # ---- teacher views: softmax((x - center) * inv_teacher_temp), streamed ----
    t_view_sum = None                          # (TB, D): sum_t softmax(teacher view t)
    t_diag = []                                # softmax of view k, k < min(T, S)
    center_acc = None                          # (1, D): sum over views+batch of raw feats
    for k in range(T):
        t_raw_k = t_ref[k].astype(jnp.float32)                 # (TB, D)
        # Center contribution taken immediately so t_raw_k's live range ends here.
        row_sum = jnp.sum(t_raw_k, axis=0, keepdims=True)      # (1, D)
        center_acc = row_sum if center_acc is None else center_acc + row_sum

        t_logits = (t_raw_k - c) * inv_teacher_temp
        t_max = jnp.max(t_logits, axis=-1, keepdims=True)
        t_exp = jnp.exp(t_logits - t_max)
        t_sum = jnp.sum(t_exp, axis=-1, keepdims=True)
        r = pl.reciprocal(t_sum, approx=True)
        r = r * (2.0 - t_sum * r)              # one Newton step -> ~f32 accurate
        t_out_k = t_exp * r
        t_view_sum = t_out_k if t_view_sum is None else t_view_sum + t_out_k
        if k < n_diag:
            t_diag.append(t_out_k)

    # ---- student views: log_softmax(x * inv_student_temp), streamed ----
    # NOTE: diagonal skipping assumes student view k corresponds to teacher view k
    # (lightly's convention, matches loss.fill_diagonal_(0)).
    loss_acc = None                            # (TB, D) elementwise accumulator
    for k in range(S):
        s_logits = s_ref[k].astype(jnp.float32) * inv_student_temp
        s_max = jnp.max(s_logits, axis=-1, keepdims=True)
        s_shift = s_logits - s_max
        s_lse = jnp.log(jnp.sum(jnp.exp(s_shift), axis=-1, keepdims=True))
        s_out_k = s_shift - s_lse
        t_factor = t_view_sum - t_diag[k] if k < n_diag else t_view_sum
        contrib = t_factor * s_out_k
        loss_acc = contrib if loss_acc is None else loss_acc + contrib

    partial_loss = jnp.sum(loss_acc, keepdims=True)            # (1, 1)
    loss_ref[...] += partial_loss[None] * loss_scale            # (1, 1, 1)
    center_ref[...] += center_acc[None] * center_scale          # (1, 1, D)


def _tpu_vmem_capacity_bytes(default=64 * 1024 * 1024):
    """Per-core VMEM capacity; conservative 64 MiB fallback (v7x size)."""
    try:
        return int(pltpu.get_tpu_info().vmem_capacity_bytes)
    except Exception:
        return default


def _choose_batch_tile(B, T, S, D, t_itemsize, s_itemsize, budget_bytes):
    """Largest legal batch tile whose per-step working set fits budget_bytes.

    Per batch row we account for the double-buffered (T + S)-view ingress plus
    the f32 slabs the per-view kernel body keeps live (~min(T,S) diag slabs +
    t_view_sum + loss_acc + a few per-view temps).
    """
    per_row = D * (2 * (T * t_itemsize + S * s_itemsize)   # 2x-buffered ingress
                   + 4 * (min(T, S) + 6))                   # live f32 slabs
    candidates = [d for d in range(8, B + 1, 8) if B % d == 0]
    if not candidates:
        return B                       # B < 8 or no /8 divisor: full-B block is legal
    fitting = [d for d in candidates if d * per_row <= budget_bytes]
    if fitting:
        return max(fitting)
    return min(candidates)             # smallest legal tile; raised vmem limit covers it


def dino_loss(teacher_out, student_out, center, *,
              teacher_temp=0.04, student_temp=0.1, center_momentum=0.9,
              batch_tile=None):
    """DINOLoss.forward (+ functional update_center).

    teacher_out: (T, B, D) array or list of (B, D); student_out likewise.
    Pass features in bf16 straight from the producing layer when possible —
    the kernel upcasts per view-tile, and bf16 halves HBM ingress on the
    mem-bound v5e/v6e generations (do NOT astype here, that adds an HBM pass).
    center: (1, 1, D). Returns (loss_scalar, new_center).
    """
    if isinstance(teacher_out, (list, tuple)):
        teacher_out = jnp.stack(teacher_out)
    if isinstance(student_out, (list, tuple)):
        student_out = jnp.stack(student_out)

    T, B, D = teacher_out.shape
    S = student_out.shape[0]
    assert student_out.shape[1:] == (B, D), (student_out.shape, teacher_out.shape)

    n_diag = min(T, S)
    n_terms = T * S - n_diag
    if n_terms == 0:
        raise ValueError("DINO loss requires at least one off-diagonal "
                         "(teacher, student) view pair (T*S > min(T, S)).")

    c2 = jnp.reshape(center, (1, D)).astype(jnp.float32)

    # Generation-aware VMEM budgeting (raises v5e/v6e's small default scoped limit).
    vmem_cap = _tpu_vmem_capacity_bytes()
    vmem_limit = max(32 << 20, int(vmem_cap * 0.8))
    if batch_tile is None:
        batch_tile = _choose_batch_tile(
            B, T, S, D,
            jnp.dtype(teacher_out.dtype).itemsize,
            jnp.dtype(student_out.dtype).itemsize,
            budget_bytes=int(vmem_cap * 0.4))
    assert B % batch_tile == 0, (B, batch_tile)
    num_tiles = B // batch_tile

    # v7x megacore: leading "parallel" axis splits batch tiles across the 2 TCs
    # with per-core accumulator blocks; partials are reduced in the wrapper.
    # On 1-TC chips (v5e/v6e) this is just a trivially short serial loop.
    num_cores = 2 if (num_tiles >= 2 and num_tiles % 2 == 0) else 1
    tiles_per_core = num_tiles // num_cores

    kernel = functools.partial(
        _dino_loss_kernel,
        inv_teacher_temp=1.0 / float(teacher_temp),
        inv_student_temp=1.0 / float(student_temp),
        loss_scale=-1.0 / float(n_terms * B),
        center_scale=(1.0 - float(center_momentum)) / float(T * B),
        n_diag=n_diag,
    )

    loss_parts, center_parts = pl.pallas_call(
        kernel,
        out_shape=(
            jax.ShapeDtypeStruct((num_cores, 1, 1), jnp.float32),
            jax.ShapeDtypeStruct((num_cores, 1, D), jnp.float32),
        ),
        grid_spec=pltpu.PrefetchScalarGridSpec(
            num_scalar_prefetch=0,
            grid=(num_cores, tiles_per_core),
            in_specs=[
                pl.BlockSpec((T, batch_tile, D),
                             lambda c, i: (0, c * tiles_per_core + i, 0)),
                pl.BlockSpec((S, batch_tile, D),
                             lambda c, i: (0, c * tiles_per_core + i, 0)),
                pl.BlockSpec((1, D), lambda c, i: (0, 0)),
            ],
            out_specs=(
                pl.BlockSpec((1, 1, 1), lambda c, i: (c, 0, 0)),
                pl.BlockSpec((1, 1, D), lambda c, i: (c, 0, 0)),
            ),
        ),
        compiler_params=pltpu.CompilerParams(
            dimension_semantics=("parallel", "arbitrary"),
            vmem_limit_bytes=int(vmem_limit)),
    )(teacher_out, student_out, c2)

    loss = jnp.sum(loss_parts)
    # Per-core center partials already carry the (1 - momentum)/(T*B) scaling;
    # add the momentum term here (tiny (1, D) op) so it isn't double counted.
    batch_term = jnp.sum(center_parts, axis=0)                  # (1, D)
    new_center = c2 * float(center_momentum) + batch_term
    new_center = jnp.reshape(new_center, (1, 1, D)).astype(center.dtype)
    return loss, new_center


def _reference(t, s, center, *,
               teacher_temp=0.04, student_temp=0.1, center_momentum=0.9):
    t = t.astype(jnp.float32)
    s = s.astype(jnp.float32)
    center = center.astype(jnp.float32)
    t_out = jax.nn.softmax((t - center) / teacher_temp, axis=-1)
    s_out = jax.nn.log_softmax(s / student_temp, axis=-1)
    loss_mat = -jnp.einsum('tbd,sbd->ts', t_out, s_out)
    T, S = loss_mat.shape
    loss_mat = loss_mat * (1.0 - jnp.eye(T, S, dtype=jnp.float32))
    n_terms = T * S - min(T, S)
    B = t.shape[1]
    loss_val = loss_mat.sum() / (n_terms * B)
    batch_center = jnp.mean(t, axis=(0, 1), keepdims=True)
    new_center = center * center_momentum + batch_center * (1.0 - center_momentum)
    return loss_val, new_center


if __name__ == "__main__":
    # Small config: 2 teacher views, 4 student views, batch=32, output_dim=256.
    T_views, S_views, B, D = 2, 4, 32, 256

    key = jax.random.PRNGKey(0)
    kt, ks, kc = jax.random.split(key, 3)
    teacher = jax.random.normal(kt, (T_views, B, D), dtype=jnp.float32)
    student = jax.random.normal(ks, (S_views, B, D), dtype=jnp.float32)
    center = 0.05 * jax.random.normal(kc, (1, 1, D), dtype=jnp.float32)

    ref_loss, ref_center = _reference(teacher, student, center)

    # Forced small batch tile -> grid (2 cores, 2 tiles/core): exercises the
    # per-core accumulator split and the inner resident-accumulator axis.
    loss, new_center = dino_loss(teacher, student, center, batch_tile=8)
    loss = jax.block_until_ready(loss)
    new_center = jax.block_until_ready(new_center)
    assert jnp.allclose(loss, ref_loss, atol=1e-4, rtol=1e-4), (loss, ref_loss)
    assert jnp.allclose(new_center, ref_center, atol=1e-5, rtol=1e-5)

    # Auto tile-selection path (single tile -> grid (1, 1)).
    loss2, new_center2 = dino_loss(teacher, student, center)
    loss2 = jax.block_until_ready(loss2)
    new_center2 = jax.block_until_ready(new_center2)
    assert jnp.allclose(loss2, ref_loss, atol=1e-4, rtol=1e-4), (loss2, ref_loss)
    assert jnp.allclose(new_center2, ref_center, atol=1e-5, rtol=1e-5)

    # bf16 ingress contract (what a production caller should pass).
    teacher_bf = teacher.astype(jnp.bfloat16)
    student_bf = student.astype(jnp.bfloat16)
    ref_loss_bf, ref_center_bf = _reference(teacher_bf, student_bf, center)
    loss3, new_center3 = dino_loss(teacher_bf, student_bf, center, batch_tile=8)
    loss3 = jax.block_until_ready(loss3)
    new_center3 = jax.block_until_ready(new_center3)
    assert jnp.allclose(loss3, ref_loss_bf, atol=2e-3, rtol=2e-3), (loss3, ref_loss_bf)
    assert jnp.allclose(new_center3, ref_center_bf, atol=2e-3, rtol=2e-3)

    print("KERNEL_OK")
</pallas_src>

<mosaic_0001>
module attributes {stable_mosaic.version = 11 : i64} {
  func.func @_dino_loss_kernel(%arg0: i32, %arg1: i32, %arg2: memref<2x8x256xf32, #tpu.memory_space<vmem>>, %arg3: memref<4x8x256xf32, #tpu.memory_space<vmem>>, %arg4: memref<1x256xf32, #tpu.memory_space<vmem>>, %arg5: memref<1x1x1xf32, #tpu.memory_space<vmem>>, %arg6: memref<1x1x256xf32, #tpu.memory_space<vmem>>) attributes {dimension_semantics = [#tpu.dimension_semantics<parallel>, #tpu.dimension_semantics<arbitrary>], iteration_bounds = array<i64: 2, 2>, scalar_prefetch = 0 : i64, scratch_operands = 0 : i64, tpu.core_type = #tpu.core_type<tc>, window_params = [{transform_indices = @transform_0, window_bounds = array<i64: 2, 8, 256>}, {transform_indices = @transform_1, window_bounds = array<i64: 4, 8, 256>}, {pipeline_mode = #tpu.pipeline_mode<synchronous>, transform_indices = @transform_2, window_bounds = array<i64: 1, 256>}, {transform_indices = @transform_3, window_bounds = array<i64: 1, 1, 1>}, {transform_indices = @transform_4, window_bounds = array<i64: 1, 1, 256>}]} {
    %c0_i32 = arith.constant 0 : i32
    %0 = arith.cmpi eq, %arg1, %c0_i32 : i32
    %1 = arith.extui %0 : i1 to i32
    %c0_i32_0 = arith.constant 0 : i32
    %2 = arith.cmpi ne, %1, %c0_i32_0 : i32
    scf.if %2 {
      %cst_53 = arith.constant 0.000000e+00 : f32
      %132 = vector.broadcast %cst_53 : f32 to vector<1x1x1xf32>
      %c0_54 = arith.constant 0 : index
      %c0_55 = arith.constant 0 : index
      %c0_56 = arith.constant 0 : index
      %133 = vector.load %arg5[%c0_54, %c0_55, %c0_56] : memref<1x1x1xf32, #tpu.memory_space<vmem>>, vector<1x1x1xf32>
      tpu.vector_store %arg5[%c0_54, %c0_55, %c0_56], %132 {strides = array<i32>} : memref<1x1x1xf32, #tpu.memory_space<vmem>>, vector<1x1x1xf32>,
      %cst_57 = arith.constant 0.000000e+00 : f32
      %134 = vector.broadcast %cst_57 : f32 to vector<1x1x256xf32>
      %c0_58 = arith.constant 0 : index
      %c0_59 = arith.constant 0 : index
      %c0_60 = arith.constant 0 : index
      %135 = vector.load %arg6[%c0_58, %c0_59, %c0_60] : memref<1x1x256xf32, #tpu.memory_space<vmem>>, vector<1x1x256xf32>
      tpu.vector_store %arg6[%c0_58, %c0_59, %c0_60], %134 {strides = array<i32>} : memref<1x1x256xf32, #tpu.memory_space<vmem>>, vector<1x1x256xf32>,
    } else {
    }
    %c0 = arith.constant 0 : index
    %c0_1 = arith.constant 0 : index
    %3 = vector.load %arg4[%c0, %c0_1] : memref<1x256xf32, #tpu.memory_space<vmem>>, vector<1x256xf32>
    %c0_2 = arith.constant 0 : index
    %c0_3 = arith.constant 0 : index
    %c0_4 = arith.constant 0 : index
    %4 = vector.load %arg2[%c0_2, %c0_3, %c0_4] : memref<2x8x256xf32, #tpu.memory_space<vmem>>, vector<1x8x256xf32>
    %5 = vector.shape_cast %4 : vector<1x8x256xf32> to vector<8x256xf32>
    %cst = arith.constant dense<0.000000e+00> : vector<256xf32>
    %6 = vector.multi_reduction <add>, %5, %cst [0] : vector<8x256xf32> to vector<256xf32>
    %7 = vector.shape_cast %6 : vector<256xf32> to vector<1x256xf32>
    %8 = vector.broadcast %3 : vector<1x256xf32> to vector<8x256xf32>
    %9 = arith.subf %5, %8 : vector<8x256xf32>
    %cst_5 = arith.constant 2.500000e+01 : f32
    %10 = vector.broadcast %cst_5 : f32 to vector<8x256xf32>
    %11 = arith.mulf %9, %10 : vector<8x256xf32>
    %cst_6 = arith.constant dense<0xFF800000> : vector<8xf32>
    %12 = vector.multi_reduction <maximumf>, %11, %cst_6 [1] : vector<8x256xf32> to vector<8xf32>
    %13 = vector.shape_cast %12 : vector<8xf32> to vector<8x1xf32>
    %14 = vector.broadcast %13 : vector<8x1xf32> to vector<8x256xf32>
    %15 = arith.subf %11, %14 : vector<8x256xf32>
    %16 = math.exp %15 : vector<8x256xf32>
    %cst_7 = arith.constant dense<0.000000e+00> : vector<8xf32>
    %17 = vector.multi_reduction <add>, %16, %cst_7 [1] : vector<8x256xf32> to vector<8xf32>
    %18 = vector.shape_cast %17 : vector<8xf32> to vector<8x1xf32>
    %19 = tpu.reciprocal %18 {approx = true} : vector<8x1xf32> -> vector<8x1xf32>
    %20 = arith.mulf %18, %19 : vector<8x1xf32>
    %cst_8 = arith.constant 2.000000e+00 : f32
    %21 = vector.broadcast %cst_8 : f32 to vector<8x1xf32>
    %22 = arith.subf %21, %20 : vector<8x1xf32>
    %23 = arith.mulf %19, %22 : vector<8x1xf32>
    %24 = vector.broadcast %23 : vector<8x1xf32> to vector<8x256xf32>
    %25 = arith.mulf %16, %24 : vector<8x256xf32>
    %c1 = arith.constant 1 : index
    %c0_9 = arith.constant 0 : index
    %c0_10 = arith.constant 0 : index
    %26 = vector.load %arg2[%c1, %c0_9, %c0_10] : memref<2x8x256xf32, #tpu.memory_space<vmem>>, vector<1x8x256xf32>
    %27 = vector.shape_cast %26 : vector<1x8x256xf32> to vector<8x256xf32>
    %cst_11 = arith.constant dense<0.000000e+00> : vector<256xf32>
    %28 = vector.multi_reduction <add>, %27, %cst_11 [0] : vector<8x256xf32> to vector<256xf32>
    %29 = vector.shape_cast %28 : vector<256xf32> to vector<1x256xf32>
    %30 = arith.addf %7, %29 : vector<1x256xf32>
    %31 = vector.broadcast %3 : vector<1x256xf32> to vector<8x256xf32>
    %32 = arith.subf %27, %31 : vector<8x256xf32>
    %cst_12 = arith.constant 2.500000e+01 : f32
    %33 = vector.broadcast %cst_12 : f32 to vector<8x256xf32>
    %34 = arith.mulf %32, %33 : vector<8x256xf32>
    %cst_13 = arith.constant dense<0xFF800000> : vector<8xf32>
    %35 = vector.multi_reduction <maximumf>, %34, %cst_13 [1] : vector<8x256xf32> to vector<8xf32>
    %36 = vector.shape_cast %35 : vector<8xf32> to vector<8x1xf32>
    %37 = vector.broadcast %36 : vector<8x1xf32> to vector<8x256xf32>
    %38 = arith.subf %34, %37 : vector<8x256xf32>
    %39 = math.exp %38 : vector<8x256xf32>
    %cst_14 = arith.constant dense<0.000000e+00> : vector<8xf32>
    %40 = vector.multi_reduction <add>, %39, %cst_14 [1] : vector<8x256xf32> to vector<8xf32>
    %41 = vector.shape_cast %40 : vector<8xf32> to vector<8x1xf32>
    %42 = tpu.reciprocal %41 {approx = true} : vector<8x1xf32> -> vector<8x1xf32>
    %43 = arith.mulf %41, %42 : vector<8x1xf32>
    %cst_15 = arith.constant 2.000000e+00 : f32
    %44 = vector.broadcast %cst_15 : f32 to vector<8x1xf32>
    %45 = arith.subf %44, %43 : vector<8x1xf32>
    %46 = arith.mulf %42, %45 : vector<8x1xf32>
    %47 = vector.broadcast %46 : vector<8x1xf32> to vector<8x256xf32>
    %48 = arith.mulf %39, %47 : vector<8x256xf32>
    %49 = arith.addf %25, %48 : vector<8x256xf32>
    %c0_16 = arith.constant 0 : index
    %c0_17 = arith.constant 0 : index
    %c0_18 = arith.constant 0 : index
    %50 = vector.load %arg3[%c0_16, %c0_17, %c0_18] : memref<4x8x256xf32, #tpu.memory_space<vmem>>, vector<1x8x256xf32>
    %51 = vector.shape_cast %50 : vector<1x8x256xf32> to vector<8x256xf32>
    %cst_19 = arith.constant 1.000000e+01 : f32
    %52 = vector.broadcast %cst_19 : f32 to vector<8x256xf32>
    %53 = arith.mulf %51, %52 : vector<8x256xf32>
    %cst_20 = arith.constant dense<0xFF800000> : vector<8xf32>
    %54 = vector.multi_reduction <maximumf>, %53, %cst_20 [1] : vector<8x256xf32> to vector<8xf32>
    %55 = vector.shape_cast %54 : vector<8xf32> to vector<8x1xf32>
    %56 = vector.broadcast %55 : vector<8x1xf32> to vector<8x256xf32>
    %57 = arith.subf %53, %56 : vector<8x256xf32>
    %58 = math.exp %57 : vector<8x256xf32>
    %cst_21 = arith.constant dense<0.000000e+00> : vector<8xf32>
    %59 = vector.multi_reduction <add>, %58, %cst_21 [1] : vector<8x256xf32> to vector<8xf32>
    %60 = vector.shape_cast %59 : vector<8xf32> to vector<8x1xf32>
    %61 = math.log %60 : vector<8x1xf32>
    %62 = vector.broadcast %61 : vector<8x1xf32> to vector<8x256xf32>
    %63 = arith.subf %57, %62 : vector<8x256xf32>
    %64 = arith.subf %49, %25 : vector<8x256xf32>
    %65 = arith.mulf %64, %63 : vector<8x256xf32>
    %c1_22 = arith.constant 1 : index
    %c0_23 = arith.constant 0 : index
    %c0_24 = arith.constant 0 : index
    %66 = vector.load %arg3[%c1_22, %c0_23, %c0_24] : memref<4x8x256xf32, #tpu.memory_space<vmem>>, vector<1x8x256xf32>
    %67 = vector.shape_cast %66 : vector<1x8x256xf32> to vector<8x256xf32>
    %cst_25 = arith.constant 1.000000e+01 : f32
    %68 = vector.broadcast %cst_25 : f32 to vector<8x256xf32>
    %69 = arith.mulf %67, %68 : vector<8x256xf32>
    %cst_26 = arith.constant dense<0xFF800000> : vector<8xf32>
    %70 = vector.multi_reduction <maximumf>, %69, %cst_26 [1] : vector<8x256xf32> to vector<8xf32>
    %71 = vector.shape_cast %70 : vector<8xf32> to vector<8x1xf32>
    %72 = vector.broadcast %71 : vector<8x1xf32> to vector<8x256xf32>
    %73 = arith.subf %69, %72 : vector<8x256xf32>
    %74 = math.exp %73 : vector<8x256xf32>
    %cst_27 = arith.constant dense<0.000000e+00> : vector<8xf32>
    %75 = vector.multi_reduction <add>, %74, %cst_27 [1] : vector<8x256xf32> to vector<8xf32>
    %76 = vector.shape_cast %75 : vector<8xf32> to vector<8x1xf32>
    %77 = math.log %76 : vector<8x1xf32>
    %78 = vector.broadcast %77 : vector<8x1xf32> to vector<8x256xf32>
    %79 = arith.subf %73, %78 : vector<8x256xf32>
    %80 = arith.subf %49, %48 : vector<8x256xf32>
    %81 = arith.mulf %80, %79 : vector<8x256xf32>
    %82 = arith.addf %65, %81 : vector<8x256xf32>
    %c2 = arith.constant 2 : index
    %c0_28 = arith.constant 0 : index
    %c0_29 = arith.constant 0 : index
    %83 = vector.load %arg3[%c2, %c0_28, %c0_29] : memref<4x8x256xf32, #tpu.memory_space<vmem>>, vector<1x8x256xf32>
    %84 = vector.shape_cast %83 : vector<1x8x256xf32> to vector<8x256xf32>
    %cst_30 = arith.constant 1.000000e+01 : f32
    %85 = vector.broadcast %cst_30 : f32 to vector<8x256xf32>
    %86 = arith.mulf %84, %85 : vector<8x256xf32>
    %cst_31 = arith.constant dense<0xFF800000> : vector<8xf32>
    %87 = vector.multi_reduction <maximumf>, %86, %cst_31 [1] : vector<8x256xf32> to vector<8xf32>
    %88 = vector.shape_cast %87 : vector<8xf32> to vector<8x1xf32>
    %89 = vector.broadcast %88 : vector<8x1xf32> to vector<8x256xf32>
    %90 = arith.subf %86, %89 : vector<8x256xf32>
    %91 = math.exp %90 : vector<8x256xf32>
    %cst_32 = arith.constant dense<0.000000e+00> : vector<8xf32>
    %92 = vector.multi_reduction <add>, %91, %cst_32 [1] : vector<8x256xf32> to vector<8xf32>
    %93 = vector.shape_cast %92 : vector<8xf32> to vector<8x1xf32>
    %94 = math.log %93 : vector<8x1xf32>
    %95 = vector.broadcast %94 : vector<8x1xf32> to vector<8x256xf32>
    %96 = arith.subf %90, %95 : vector<8x256xf32>
    %97 = arith.mulf %49, %96 : vector<8x256xf32>
    %98 = arith.addf %82, %97 : vector<8x256xf32>
    %c3 = arith.constant 3 : index
    %c0_33 = arith.constant 0 : index
    %c0_34 = arith.constant 0 : index
    %99 = vector.load %arg3[%c3, %c0_33, %c0_34] : memref<4x8x256xf32, #tpu.memory_space<vmem>>, vector<1x8x256xf32>
    %100 = vector.shape_cast %99 : vector<1x8x256xf32> to vector<8x256xf32>
    %cst_35 = arith.constant 1.000000e+01 : f32
    %101 = vector.broadcast %cst_35 : f32 to vector<8x256xf32>
    %102 = arith.mulf %100, %101 : vector<8x256xf32>
    %cst_36 = arith.constant dense<0xFF800000> : vector<8xf32>
    %103 = vector.multi_reduction <maximumf>, %102, %cst_36 [1] : vector<8x256xf32> to vector<8xf32>
    %104 = vector.shape_cast %103 : vector<8xf32> to vector<8x1xf32>
    %105 = vector.broadcast %104 : vector<8x1xf32> to vector<8x256xf32>
    %106 = arith.subf %102, %105 : vector<8x256xf32>
    %107 = math.exp %106 : vector<8x256xf32>
    %cst_37 = arith.constant dense<0.000000e+00> : vector<8xf32>
    %108 = vector.multi_reduction <add>, %107, %cst_37 [1] : vector<8x256xf32> to vector<8xf32>
    %109 = vector.shape_cast %108 : vector<8xf32> to vector<8x1xf32>
    %110 = math.log %109 : vector<8x1xf32>
    %111 = vector.broadcast %110 : vector<8x1xf32> to vector<8x256xf32>
    %112 = arith.subf %106, %111 : vector<8x256xf32>
    %113 = arith.mulf %49, %112 : vector<8x256xf32>
    %114 = arith.addf %98, %113 : vector<8x256xf32>
    %115 = vector.shape_cast %114 : vector<8x256xf32> to vector<1x8x256xf32>
    %cst_38 = arith.constant dense<0.000000e+00> : vector<1xf32>
    %116 = vector.multi_reduction <add>, %115, %cst_38 [1, 2] : vector<1x8x256xf32> to vector<1xf32>
    %117 = vector.shape_cast %116 : vector<1xf32> to vector<1x1x1xf32>
    %118 = vector.extract %117[0, 0, 0] : f32 from vector<1x1x1xf32>
    %119 = vector.broadcast %118 : f32 to vector<1x1xf32>
    %c0_39 = arith.constant 0 : index
    %c0_40 = arith.constant 0 : index
    %c0_41 = arith.constant 0 : index
    %120 = vector.load %arg5[%c0_39, %c0_40, %c0_41] : memref<1x1x1xf32, #tpu.memory_space<vmem>>, vector<1x1x1xf32>
    %121 = vector.shape_cast %119 : vector<1x1xf32> to vector<1x1x1xf32>
    %cst_42 = arith.constant -0.00520833349 : f32
    %122 = vector.broadcast %cst_42 : f32 to vector<1x1x1xf32>
    %123 = arith.mulf %121, %122 : vector<1x1x1xf32>
    %124 = arith.addf %120, %123 : vector<1x1x1xf32>
    %c0_43 = arith.constant 0 : index
    %c0_44 = arith.constant 0 : index
    %c0_45 = arith.constant 0 : index
    %125 = vector.load %arg5[%c0_43, %c0_44, %c0_45] : memref<1x1x1xf32, #tpu.memory_space<vmem>>, vector<1x1x1xf32>
    tpu.vector_store %arg5[%c0_43, %c0_44, %c0_45], %124 {strides = array<i32>} : memref<1x1x1xf32, #tpu.memory_space<vmem>>, vector<1x1x1xf32>,
    %c0_46 = arith.constant 0 : index
    %c0_47 = arith.constant 0 : index
    %c0_48 = arith.constant 0 : index
    %126 = vector.load %arg6[%c0_46, %c0_47, %c0_48] : memref<1x1x256xf32, #tpu.memory_space<vmem>>, vector<1x1x256xf32>
    %127 = vector.shape_cast %30 : vector<1x256xf32> to vector<1x1x256xf32>
    %cst_49 = arith.constant 1.562500e-03 : f32
    %128 = vector.broadcast %cst_49 : f32 to vector<1x1x256xf32>
    %129 = arith.mulf %127, %128 : vector<1x1x256xf32>
    %130 = arith.addf %126, %129 : vector<1x1x256xf32>
    %c0_50 = arith.constant 0 : index
    %c0_51 = arith.constant 0 : index
    %c0_52 = arith.constant 0 : index
    %131 = vector.load %arg6[%c0_50, %c0_51, %c0_52] : memref<1x1x256xf32, #tpu.memory_space<vmem>>, vector<1x1x256xf32>
    tpu.vector_store %arg6[%c0_50, %c0_51, %c0_52], %130 {strides = array<i32>} : memref<1x1x256xf32, #tpu.memory_space<vmem>>, vector<1x1x256xf32>,
    return
  }
  func.func @transform_0(%arg0: i32, %arg1: i32) -> (i32, i32, i32) {
    %c2_i32 = arith.constant 2 : i32
    %0 = arith.muli %arg0, %c2_i32 : i32
    %1 = arith.addi %0, %arg1 : i32
    %c0_i32 = arith.constant 0 : i32
    %c0_i32_0 = arith.constant 0 : i32
    %c0_i32_1 = arith.constant 0 : i32
    return %c0_i32, %1, %c0_i32_0 : i32, i32, i32
  }
  func.func @transform_1(%arg0: i32, %arg1: i32) -> (i32, i32, i32) {
    %c2_i32 = arith.constant 2 : i32
    %0 = arith.muli %arg0, %c2_i32 : i32
    %1 = arith.addi %0, %arg1 : i32
    %c0_i32 = arith.constant 0 : i32
    %c0_i32_0 = arith.constant 0 : i32
    %c0_i32_1 = arith.constant 0 : i32
    return %c0_i32, %1, %c0_i32_0 : i32, i32, i32
  }
  func.func @transform_2(%arg0: i32, %arg1: i32) -> (i32, i32) {
    %c0_i32 = arith.constant 0 : i32
    %c0_i32_0 = arith.constant 0 : i32
    %c0_i32_1 = arith.constant 0 : i32
    return %c0_i32, %c0_i32_0 : i32, i32
  }
  func.func @transform_3(%arg0: i32, %arg1: i32) -> (i32, i32, i32) {
    %c0_i32 = arith.constant 0 : i32
    %c0_i32_0 = arith.constant 0 : i32
    %c0_i32_1 = arith.constant 0 : i32
    return %arg0, %c0_i32, %c0_i32_0 : i32, i32, i32
  }
  func.func @transform_4(%arg0: i32, %arg1: i32) -> (i32, i32, i32) {
    %c0_i32 = arith.constant 0 : i32
    %c0_i32_0 = arith.constant 0 : i32
    %c0_i32_1 = arith.constant 0 : i32
    return %arg0, %c0_i32, %c0_i32_0 : i32, i32, i32
  }
}

</mosaic_0001>

<bundles_post_ra>
// kernel: tpu_custom_call.1
= control target key start
LH: loop header
LB: loop body
LE: loop exit
PB: predicated region body
PF: predicated region fallthrough
CT: control target
= control target key end

     0   :  { %s1462_s0 = inlined_call_operand.hbm [shape: f32[2,32,256], index: 0, kind: input, shape index: {}]   ;;  %s1463_s1 = inlined_call_operand.hbm [shape: f32[4,32,256], index: 1, kind: input, shape index: {}]   ;;  %s1464_s2 = inlined_call_operand.vmem [shape: f32[1,256], index: 2, kind: input, shape index: {}]   ;;  %s1465_s3 = inlined_call_operand.vmem [shape: f32[2,1,1], index: 3, kind: output, shape index: {0}]   ;;  %s1466_s4 = inlined_call_operand.hbm [shape: f32[2,1,256], index: 4, kind: output, shape index: {1}]  }
   0x1   :  { %1475 = sst [smem:[#allocation18_spill]] %s1462_s0 }
   0x2   :  { %10 = vsyncpa [#allocation3], 0 }
   0x3   :  { %12 = vsyncpa [#allocation3 + $0x1], 0 }
   0x4   :  { %13 = vsyncpa [#allocation6], 0 }
   0x5   :  { %15 = vsyncpa [#allocation6 + $0x1], 0 }
   0x6   :  { %16 = vsyncpa [#allocation4], 0 }
   0x7   :  { %18 = vsyncpa [#allocation4 + $0x1], 0  ;;  %s1093_s15 = smov 0   ;;  %s1095_s16 = smov 0  }
   0x8   :  { %s1097_s17 = smov 0   ;;  %s1099_s18 = smov 0  }
   0x9   :  { %s1101_s19 = smov 0   ;;  %s1103_s20 = smov 0  }
   0xa   :  { %s1105_s21 = smov 0   ;;  %s1107_s22 = smov 0  }
   0xb   :  { %s1109_s23 = smov 0   ;;  %s1111_s24 = smov 0  }
   0xc   :  { %s1113_s25 = smov 0  }
   0xd LB: > { %1476 = sst [smem:[#allocation11_spill]] %s1038_s20  ;;  %s685_s26 = sadd.s32 4294967295, %s1058_s25   ;;  %s1058_s25 = sphi %s1113_s25, %s24_s25   ;;  %s1054_s24 = sphi %s1111_s24, %s1502_s24   ;;  %s1050_s23 = sphi %s1109_s23, %s1501_s23   ;;  %s1046_s22 = sphi %s1107_s22, %s1500_s22   ;;  %s1042_s21 = sphi %s1105_s21, %s1499_s21   ;;  %s1038_s20 = sphi %s1103_s20, %s1498_s20   ;;  %s1034_s19 = sphi %s1101_s19, %s1507_s19   ;;  %s1030_s18 = sphi %s1099_s18, %s1506_s18   ;;  %s1026_s17 = sphi %s1097_s17, %s1505_s17   ;;  %s1022_s16 = sphi %s1095_s16, %s1504_s16   ;;  %s1018_s15 = sphi %s1093_s15, %s1503_s15  }
   0xe   : > { %1477 = sst [smem:[#allocation12_spill]] %s1050_s23  ;;  %s686_s27 = sadd.s32 4294967294, %s1058_s25  }
   0xf   : > { %1478 = sst [smem:[#allocation13_spill]] %s1054_s24  ;;  %s33_s28 = sadd.s32 1, %s1050_s23 }
  0x10   : > { %s36_s29 = sadd.s32 1, %s1054_s24  ;;  %p34_p0 = scmp.ge.s32.totalorder %s33_s28, 2 }
  0x11   : > { %s687_s30 = sshll.u32 %s1054_s24, 1  ;;  %s47_s6 = sadd.s32 1, %s1038_s20 }
  0x12   : > { %s1152_s5 = sadd.s32 %s1050_s23, %s687_s30  ;;  %s1509_s28 = smov (%p34_p0, %s33_s28), 0 }
  0x13   : > { %1479 = sst [smem:[#allocation14_spill]] %s1509_s28  ;;  %s1511_s29 = smov (!%p34_p0, %s36_s29), %s1054_s24 }
  0x14   : > { %p54_p1 = scmp.ne.s32.totalorder %s1038_s20, %s1034_s19  ;;  %p55_p2 = scmp.eq.s32.totalorder %s1058_s25, 0 }
  0x15   : > { %p38_p3 = scmp.ge.s32.totalorder %s1511_s29, 2  ;;  %p60_p4 = scmp.ne.s32.totalorder %s1034_s19, %s1030_s18 }
  0x16   : > { %p1162_p5 = por %p55_p2, %p54_p1  ;;  %p61_p6 = scmp.eq.s32.totalorder %s685_s26, 0 }
  0x17   : > { %s1513_s29 = smov (%p38_p3, %s1511_s29), 0  ;;  %s150_s9 = sadd.s32 1, %s1026_s17 }
  0x18   : > { %1481 = sst [smem:[#allocation15_spill]] %s1513_s29  ;;  %p1168_p7 = por %p61_p6, %p60_p4 }
  0x19   : > { %s688_s10 = sshll.u32 %s1513_s29, 1  ;;  %s147_s11 = ssub.s32 %s1054_s24, %s1513_s29 }
  0x1a   : > { %s1482_s8 = scalar_select %p1168_p7, 1, 0 }
  0x1b   : > { %s43_s12 = sadd.s32 %s688_s10, %s1509_s28  ;;  %p148_p8 = scmp.eq.s32.totalorder %s147_s11, 0 }
  0x1c   : > { %s44_s13 = ssub.s32 %s1152_s5, %s43_s12  ;;  %p160_p9 = scmp.ne.s32.totalorder %s1026_s17, %s1022_s16 }
  0x1d   : > { %p45_p10 = scmp.eq.s32.totalorder %s44_s13, 0  ;;  %p161_p11 = scmp.eq.s32.totalorder %s685_s26, 3 }
  0x1e   : > { %s1181_s14 = scalar_select %p148_p8, %s1026_s17, %s150_s9  }
  0x1f   : > { %s1184_s18 = scalar_select %p45_p10, %s1038_s20, %s47_s6  }
  0x20   : > { %1483 = sst [smem:[#allocation16_spill]] %s1181_s14  ;;  %p1186_p12 = por %p161_p11, %p160_p9 }
  0x21   : > { %1484 = sst [smem:[#allocation17_spill]] %s1184_s18  ;;  %p166_p13 = scmp.ne.s32.totalorder %s1022_s16, %s1018_s15 }
  0x22   : > { %s1485_s30 = scalar_select %p1186_p12, 1, 0 }
  0x23   : > { %p167_p0 = scmp.eq.s32.totalorder %s686_s27, 3  ;;  %p741_p1 = scmp.lt.s32.totalorder %s1058_s25, 4 }
  0x24   : > { %s1196_s10 = sand.u32 1, %s1038_s20   ;;  %s1470_s9 = sshll.u32 %s1152_s5, 8 }
  0x25   : > { %p1198_p2 = por %p167_p0, %p166_p13  ;;  %s693_s26 = sshll.u32 %s1196_s10, 5 }
  0x26   : > { %s1487_s0 = sld [smem:[#allocation18_spill]]  ;;  %s194_s27 = scalar_lea.vmem [#allocation2], %s693_s26 }
  0x27   : > { %s1486_s11 = scalar_select %p1198_p2, 1, 0 }
  0x28   : > { %s203_s29 = sshll.u32 %s194_s27, 4  ;;  %p1213_p3 = pnand %p741_p1, %p1162_p5  ;;  %s1217_s29 = int_to_ptr.vmem [resolvable:$true] %s203_s29 }
  0x2a   : > { %p874_p8 = pneg %p1213_p3 }
  0x2c   : > { %s1209_s13 = scalar_lea.hbm %s1487_s0, %s1470_s9  ;;  %s877_s12 = scalar_lea.hbm %s1487_s0, 2048 }
  0x2d   : > { %s872_s6 = scalar_lea.hbm %s1209_s13, 512  ;;  %p878_p5 = scmp.lt.u32.totalorder %s1209_s13, %s1487_s0 }
  0x2e   : > { %p873_p6 = scmp.ne.s32.totalorder %s1209_s13, %s872_s6  ;;  %p879_p11 = scmp.lt.u32.totalorder %s877_s12, %s872_s6 }
  0x2f   : > { %p881_p0 = scmp.lt.u32.totalorder %s872_s6, %s1209_s13 }
  0x30   : > { %p875_p9 = pnand %p874_p8, %p873_p6  ;;  %p880_p13 = por %p879_p11, %p878_p5 }
  0x32   : > { %p876_p10 = pneg %p875_p9  ;;  %p882_p1 = por %p881_p0, %p880_p13 }
  0x34   : > { %p883_p4 = pnand %p882_p1, %p876_p10 }
  0x36   : > { %886 = shalt.err (!%p883_p4)
}
  0x37   : > { %s887_s24 = scalar_lea.vmem %s1217_s29, 512  ;;  %s1060_s26 = smov [#allocation2]  }
  0x38   : > { %p888_p6 = scmp.ne.s32.totalorder %s1217_s29, %s887_s24  ;;  %s892_s7 = sshll.u32 %s1060_s26, 4  ;;  %s893_s7 = int_to_ptr.vmem [resolvable:$false] %s892_s7 }
  0x39   : > { %s894_s9 = scalar_lea.vmem %s893_s7, 1024  ;;  %p895_p12 = scmp.lt.s32.totalorder %s1217_s29, %s893_s7 }
  0x3a   : > { %p890_p9 = pnand %p888_p6, %p874_p8  ;;  %p896_p5 = scmp.lt.s32.totalorder %s894_s9, %s887_s24 }
  0x3c   : > { %p891_p2 = pneg %p890_p9  ;;  %p897_p11 = por %p896_p5, %p895_p12 }
  0x3e   : > { %p898_p13 = pnand %p897_p11, %p891_p2 }
  0x40   : > { %901 = shalt.err (!%p898_p13)
}
  0x41   : > { %s1061_s6 = smov 1024   ;;  %s1062_s12 = smov 256  }
  0x42   : > { %s1063_s27 = smov 16   ;;  %s1489_s24 = scalar_lea.sflag [#allocation3], %s1196_s10 }
  0x43   : > { %733 = dma.hbm_to_vmem [thread:$0]  (!%p1213_p3), %s1209_s13, 512, %s1217_s29, %s1489_s24, %s1061_s6, %s1062_s12, %s1063_s27  }
  0x44   : > { %p234_p12 = scmp.lt.s32.totalorder %s1058_s25, 5  ;;  %s697_s26 = sshll.u32 %s1196_s10, 6 }
  0x45   : > { %s1490_s7 = sshll.u32 %s1152_s5, 8  ;;  %p1491_p2 = scmp.ge.s32.totalorder %s1058_s25, 1 }
  0x46   : > { %s1258_s23 = scalar_lea.hbm %s1463_s1, %s1490_s7  ;;  %s217_s20 = scalar_lea.vmem [#allocation5], %s697_s26 }
  0x47   : > { %p1262_p4 = pnand %p1491_p2, %p234_p12  ;;  %s226_s14 = sshll.u32 %s217_s20, 4  ;;  %s1266_s14 = int_to_ptr.vmem [resolvable:$true] %s226_s14 }
  0x48   : > { %s214_s29 = scalar_lea.sflag [#allocation6], %s1196_s10  ;;  %s902_s5 = scalar_lea.hbm %s1258_s23, 1024 }
  0x49   : > { %p903_p10 = scmp.ne.s32.totalorder %s1258_s23, %s902_s5  ;;  %s907_s24 = scalar_lea.hbm %s1463_s1, 4096 }
  0x4a   : > { %p908_p6 = scmp.lt.u32.totalorder %s1258_s23, %s1463_s1  ;;  %p909_p9 = scmp.lt.u32.totalorder %s907_s24, %s902_s5 }
  0x4b   : > { %p905_p0 = pnand %p903_p10, %p874_p8  ;;  %p911_p11 = scmp.lt.u32.totalorder %s902_s5, %s1258_s23 }
  0x4c   : > { %p910_p5 = por %p909_p9, %p908_p6 }
  0x4d   : > { %p906_p1 = pneg %p905_p0 }
  0x4e   : > { %p912_p13 = por %p911_p11, %p910_p5 }
  0x50   : > { %p913_p12 = pnand %p912_p13, %p906_p1 }
  0x52   : > { %916 = shalt.err (!%p913_p12)
}
  0x53   : > { %s917_s20 = scalar_lea.vmem %s1266_s14, 1024  ;;  %s1064_s26 = smov [#allocation5]  }
  0x54   : > { %p918_p2 = scmp.ne.s32.totalorder %s1266_s14, %s917_s20  ;;  %s922_s0 = sshll.u32 %s1064_s26, 4  ;;  %s923_s0 = int_to_ptr.vmem [resolvable:$false] %s922_s0 }
  0x55   : > { %s924_s13 = scalar_lea.vmem %s923_s0, 2048  ;;  %p925_p7 = scmp.lt.s32.totalorder %s1266_s14, %s923_s0 }
  0x56   : > { %p920_p10 = pnand %p918_p2, %p874_p8  ;;  %p926_p6 = scmp.lt.s32.totalorder %s924_s13, %s917_s20 }
  0x58   : > { %p921_p0 = pneg %p920_p10  ;;  %p927_p9 = por %p926_p6, %p925_p7 }
  0x5a   : > { %p928_p5 = pnand %p927_p9, %p921_p0 }
  0x5c   : > { %931 = shalt.err (!%p928_p5)
}
  0x5d   : > { %736 = dma.hbm_to_vmem [thread:$0]  (!%p1213_p3), %s1258_s23, 1024, %s1266_s14, %s214_s29, %s1061_s6, %s1062_s12, %s1063_s27  }
  0x5e   : > { %238 = sbr.rel (%p1262_p4) target bundleno = 678 (0x2a6), region = 32  ;;  %s240_s5 = sand.u32 (!%p1262_p4), 1, %s1034_s19  }
  0x5f   : > { %s702_s24 = sshll.u32 (!%p1262_p4), %s240_s5, 5  ;;  %s241_s7 = scalar_lea.sflag (!%p1262_p4), [#allocation3], %s240_s5 }
  0x60   : > { %s1300_s9 = scalar_lea.vmem (!%p1262_p4), [#allocation2], %s702_s24  ;;  %p1493_p7 = scmp.ne.s32.totalorder (!%p1262_p4), %s1482_s8, 0 }
  0x65   : > { %1005 = dma.done.wait (%p1493_p7), %s241_s7, 512  }
  0x66   : > { %1007 = vsyncadd (%p1493_p7), %s241_s7, 4294966784  ;;  %s703_s28 = sshll.u32 %s240_s5, 6  ;;  %s250_s10 = scalar_lea.sflag [#allocation6], %s240_s5 }
  0x67   : > { %s1306_s20 = scalar_lea.vmem [#allocation5], %s703_s28 }
  0x68   : > { %1009 = dma.done.wait (%p1493_p7), %s250_s10, 1024  }
  0x69   : > { %1011 = vsyncadd (%p1493_p7), %s250_s10, 4294966272  ;;  %s283_s23 = sand.u32 1, %s1022_s16   ;;  %p290_p3 = scmp.lt.s32.totalorder %s1046_s22, 1 }
  0x6a   : > { %s704_s14 = sshll.u32 %s283_s23, 1  ;;  %p705_p8 = scmp.ne.s32.totalorder %s1042_s21, 0 }
  0x6b   : > { %s291_s18 = scalar_select %p290_p3, %s1046_s22, 1 }
  0x6c   : > { %s1322_s29 = scalar_lea.vmem [#allocation7], %s704_s14  ;;  %296 = sbr.rel (%p705_p8) target bundleno = 115 (0x73), region = 44  ;;  %vm297_vm0 = vcmask (!%p705_p8), 0   ;;  %v299_v0 = vlaneseq (!%p705_p8)  ;;  %v1065_v1 = vmov (!%p705_p8), 0.0  }
  0x6d   : > { %s1320_s27 = scalar_lea.vmem %s1465_s3, %s291_s18 }
  0x6e   : > { %298 = vst.msk [vmem:[%s1320_s27] sm:$0x1] (!%p705_p8), %vm297_vm0, %v1065_v1  ;;  %vm301_vm1 = vcmp.lt.s32.totalorder (!%p705_p8), %v299_v0, 256 }
  0x6f   : > { %303 = vst.msk [vmem:[%s1322_s29] sm:$0x3] (!%p705_p8), %vm301_vm1, %v1065_v1 }
  0x73 PF: > { %v305_v2 = vld [vmem:[%s1300_s9] sm:$0xff]  ;;  %v306_v3 = vld [vmem:[%s1300_s9 + $0x8] sm:$0xff]  ;;  %v320_v4 = vlaneseq  ;;  %v706_v9 = vld [vmem:[%s1300_s9 + $0x10] sm:$0xff]  ;;  %s721_s26 = sshll.u32 %s1046_s22, 5  ;;  %s558_s0 = sshll.u32 %s1322_s29, 4  ;;  %s559_s0 = int_to_ptr.vmem [resolvable:$true] %s558_s0 }
  0x74   : > { %v307_v5 = vrot.slane %v305_v2, 4  ;;  %v313_v6 = vrot.slane %v306_v3, 4  ;;  %v393_v7 = vld [vmem:[%s1306_s20] sm:$0xff]  ;;  %v394_v8 = vld [vmem:[%s1306_s20 + $0x8] sm:$0xff]  ;;  %v707_v13 = vld [vmem:[%s1300_s9 + $0x18] sm:$0xff]  ;;  %v355_v14 = vrot.slane %v706_v9, 4  ;;  %s1402_s24 = scalar_lea.hbm %s1466_s4, %s721_s26 }
  0x75   : > { %v1333_v10 = vshrl.u32 %v320_v4, 7  ;;  %v1335_v11 = vmul.f32 10.0, %v393_v7  ;;  %v1337_v12 = vmul.f32 10.0, %v394_v8  ;;  %v708_v15 = vld [vmem:[%s1306_s20 + $0x10] sm:$0xff]  ;;  %v304_v16 = vld [vmem:[%s1464_s2] sm:$0x3] }
  0x76   : > { %v308_v17 = vadd.f32 %v307_v5, %v305_v2  ;;  %v314_v18 = vadd.f32 %v313_v6, %v306_v3  ;;  %v361_v19 = vrot.slane %v707_v13, 4  ;;  %v709_v20 = vld [vmem:[%s1306_s20 + $0x18] sm:$0xff]  ;;  %v420_v21 = vmul.f32 10.0, %v708_v15  ;;  %v712_v45 = vld [vmem:[%s1306_s20 + $0x30] sm:$0xff]  ;;  %v710_v55 = vld [vmem:[%s1306_s20 + $0x20] sm:$0xff]  ;;  %s541_s7 = scalar_lea.sflag [#allocation4], %s283_s23 }
  0x77   : > { %v322_v22 = vsub.s32 0, %v1333_v10  ;;  %v326_v23 = vsub.s32 1, %v1333_v10  ;;  %v397_v24 = vmax.f32 %v1335_v11, %v1337_v12  ;;  %v356_v25 = vadd.f32 %v706_v9, %v355_v14  ;;  %v713_v50 = vld [vmem:[%s1306_s20 + $0x38] sm:$0xff]  ;;  %v711_v56 = vld [vmem:[%s1306_s20 + $0x28] sm:$0xff]  ;;  %s932_s9 = scalar_lea.vmem %s559_s0, 32  ;;  %p1494_p1 = scmp.ne.s32.totalorder %s1485_s30, 0 }
  0x78   : > { %v309_v26 = vrot.slane %v308_v17, 2  ;;  %v315_v27 = vrot.slane %v314_v18, 2  ;;  %v362_v28 = vadd.f32 %v707_v13, %v361_v19  ;;  %v421_v29 = vmul.f32 10.0, %v709_v20  ;;  %p933_p4 = scmp.ne.s32.totalorder %s559_s0, %s932_s9  ;;  %s1067_s28 = smov [#allocation7]  }
  0x79   : > { %v323_v30 = vrot.slane %v304_v16, %v322_v22  ;;  %v327_v31 = vrot.slane %v304_v16, %v326_v23  ;;  %398 = vmax.xlane.f32.xlu1 %v397_v24  ;;  %v357_v32 = vrot.slane %v356_v25, 2  ;;  %v472_v59 = vmul.f32 10.0, %v712_v45  ;;  %s936_s10 = sshll.u32 %s1067_s28, 4  ;;  %s937_s10 = int_to_ptr.vmem [resolvable:$false] %s936_s10 }
  0x7a   : > { %v310_v33 = vadd.f32 %v309_v26, %v308_v17  ;;  %v316_v34 = vadd.f32 %v315_v27, %v314_v18  ;;  %v363_v35 = vrot.slane %v362_v28, 2  ;;  %v422_v36 = vmax.f32 %v420_v21, %v421_v29  ;;  %p934_p11 = pnand %p933_p4, %p1494_p1  ;;  %s938_s20 = scalar_lea.vmem %s937_s10, 64 }
  0x7b   : > { %v330_v37 = vsub.f32 %v305_v2, %v323_v30  ;;  %v331_v38 = vsub.f32 %v306_v3, %v327_v31  ;;  %v358_v39 = vadd.f32 %v357_v32, %v356_v25  ;;  %v369_v40 = vsub.f32 %v706_v9, %v323_v30  ;;  %p939_p12 = scmp.lt.s32.totalorder %s559_s0, %s937_s10  ;;  %p940_p2 = scmp.lt.s32.totalorder %s938_s20, %s932_s9 }
  0x7c   : > { %v311_v41 = vrot.slane %v310_v33, 1  ;;  %v317_v42 = vrot.slane %v316_v34, 1  ;;  %v364_v43 = vadd.f32 %v363_v35, %v362_v28  ;;  %v370_v44 = vsub.f32 %v707_v13, %v327_v31  ;;  %p935_p13 = pneg %p934_p11 }
  0x7d   : > { %v332_v46 = vmul.f32 25.0, %v330_v37  ;;  %v333_v47 = vmul.f32 25.0, %v331_v38  ;;  %v359_v48 = vrot.slane %v358_v39, 1  ;;  %v371_v49 = vmul.f32 25.0, %v369_v40  ;;  %423 = vmax.xlane.f32.xlu1 %v422_v36  ;;  %p941_p10 = por %p940_p2, %p939_p12 }
  0x7e   : > { %v312_v51 = vadd.f32 %v311_v41, %v310_v33  ;;  %v318_v52 = vadd.f32 %v317_v42, %v316_v34  ;;  %v365_v53 = vrot.slane %v364_v43, 1  ;;  %v372_v54 = vmul.f32 25.0, %v370_v44 }
  0x7f   : > { %v334_v57 = vmax.f32 %v332_v46, %v333_v47  ;;  %v360_v58 = vadd.f32 %v359_v48, %v358_v39  ;;  %v473_v61 = vmul.f32 10.0, %v713_v50  ;;  %v447_v0 = vmul.f32 10.0, %v710_v55  ;;  %p942_p0 = pnand %p941_p10, %p935_p13 }
  0x80   : > { %v366_v60 = vadd.f32 %v365_v53, %v364_v43  ;;  %v373_v63 = vmax.f32 %v371_v49, %v372_v54  ;;  %v448_v1 = vmul.f32 10.0, %v711_v56  ;;  %vm534_vm2 = vcmp.lt.s32.totalorder %v320_v4, 256 }
  0x81   : > { %335 = vmax.xlane.f32.xlu0 %v334_v57  ;;  %v1353_v62 = vadd.f32 %v360_v58, %v312_v51  ;;  %v474_v3 = vmax.f32 %v472_v59, %v473_v61 }
  0x82   : > { %v1355_v2 = vadd.f32 %v366_v60, %v318_v52  ;;  %v449_v5 = vmax.f32 %v447_v0, %v448_v1 }
  0x83   : > { %475 = vmax.xlane.f32.xlu1 %v474_v3 }
  0x85   : > { %374 = vmax.xlane.f32.xlu0 %v373_v63 }
  0x89   : > { %450 = vmax.xlane.f32.xlu0 %v449_v5 }
 0x106   : > { %v399_v6 = vpop.xlane.xlu1 %398 }
 0x107   : > { %v1358_v7 = vsub.f32 %v1335_v11, %v399_v6  ;;  %v1361_v8 = vsub.f32 %v1337_v12, %v399_v6 }
 0x109   : > { %v402_v13 = vmul.f32 1.442695, %v1358_v7  ;;  %v404_v16 = vmul.f32 1.442695, %v1361_v8 }
 0x10a   : > { %v424_v9 = vpop.xlane.xlu1 %423 }
 0x10b   : > { %v1364_v14 = vsub.f32 %v420_v21, %v424_v9  ;;  %v1367_v17 = vsub.f32 %v421_v29, %v424_v9  ;;  %836 = vpow2.f32 %v402_v13 }
 0x10c   : > { %838 = vpow2.f32 %v404_v16 }
 0x10d   : > { %v427_v11 = vmul.f32 1.442695, %v1364_v14  ;;  %v429_v24 = vmul.f32 1.442695, %v1367_v17 }
 0x10e   : > { %v336_v15 = vpop.xlane.xlu0 %335 }
 0x10f   : > { %v337_v18 = vsub.f32 %v332_v46, %v336_v15  ;;  %v338_v19 = vsub.f32 %v333_v47, %v336_v15 }
 0x110   : > { %v476_v23 = vpop.xlane.xlu1 %475 }
 0x111   : > { %v339_v20 = vmul.f32 1.442695, %v337_v18  ;;  %v341_v22 = vmul.f32 1.442695, %v338_v19  ;;  %v1371_v25 = vsub.f32 %v472_v59, %v476_v23  ;;  %v1373_v21 = vsub.f32 %v473_v61, %v476_v23 }
 0x112   : > { %v375_v12 = vpop.xlane.xlu0 %374 }
 0x113   : > { %840 = vpow2.f32 %v339_v20  ;;  %v376_v26 = vsub.f32 %v371_v49, %v375_v12  ;;  %v377_v27 = vsub.f32 %v372_v54, %v375_v12  ;;  %v479_v30 = vmul.f32 1.442695, %v1371_v25 }
 0x114   : > { %842 = vpow2.f32 %v341_v22  ;;  %v481_v32 = vmul.f32 1.442695, %v1373_v21 }
 0x115   : > { %v378_v28 = vmul.f32 1.442695, %v376_v26  ;;  %v380_v29 = vmul.f32 1.442695, %v377_v27  ;;  %844 = vpow2.f32 %v427_v11  ;;  %v837_v37 = vpop.eup %836 }
 0x116   : > { %846 = vpow2.f32 %v429_v24  ;;  %v451_v31 = vpop.xlane.xlu0 %450  ;;  %v839_v38 = vpop.eup %838 }
 0x117   : > { %848 = vpow2.f32 %v378_v28  ;;  %v1377_v33 = vsub.f32 %v447_v0, %v451_v31  ;;  %v1379_v34 = vsub.f32 %v448_v1, %v451_v31  ;;  %v406_v45 = vadd.f32 %v839_v38, %v837_v37 }
 0x118   : > { %850 = vpow2.f32 %v380_v29 }
 0x119   : > { %v454_v35 = vmul.f32 1.442695, %v1377_v33  ;;  %v456_v36 = vmul.f32 1.442695, %v1379_v34  ;;  %852 = vpow2.f32 %v479_v30 }
 0x11a   : > { %854 = vpow2.f32 %v481_v32 }
 0x11b   : > { %856 = vpow2.f32 %v454_v35 }
 0x11c   : > { %858 = vpow2.f32 %v456_v36 }
 0x11d   : > { %v841_v39 = vpop.eup %840 }
 0x11e   : > { %v843_v40 = vpop.eup %842 }
 0x11f   : > { %v845_v41 = vpop.eup %844  ;;  %v343_v42 = vadd.f32 %v843_v40, %v841_v39 }
 0x120   : > { %v847_v43 = vpop.eup %846 }
 0x121   : > { %v849_v44 = vpop.eup %848  ;;  %344 = vadd.xlane.f32.xlu0 %v343_v42  ;;  %v431_v51 = vadd.f32 %v847_v43, %v845_v41 }
 0x122   : > { %v851_v46 = vpop.eup %850 }
 0x123   : > { %v853_v47 = vpop.eup %852  ;;  %v382_v48 = vadd.f32 %v851_v46, %v849_v44 }
 0x124   : > { %v855_v49 = vpop.eup %854 }
 0x125   : > { %v857_v50 = vpop.eup %856  ;;  %407 = vadd.xlane.f32.xlu0 %v406_v45  ;;  %383 = vadd.xlane.f32.xlu1 %v382_v48  ;;  %v483_v54 = vadd.f32 %v855_v49, %v853_v47 }
 0x126   : > { %v859_v52 = vpop.eup %858 }
 0x127   : > { %v458_v53 = vadd.f32 %v859_v52, %v857_v50  ;;  %v511_v52 = vmul.f32 0.0015625, %v1353_v62 }
 0x129   : > { %432 = vadd.xlane.f32.xlu1 %v431_v51  ;;  %459 = vadd.xlane.f32.xlu0 %v458_v53  ;;  %v512_v53 = vmul.f32 0.0015625, %v1355_v2 }
 0x12d   : > { %484 = vadd.xlane.f32.xlu1 %v483_v54 }
 0x1ae   : > { %v345_v55 = vpop.xlane.xlu0 %344 }
 0x1af   : > { %860 = vrcp.f32 %v345_v55 }
 0x1b2   : > { %v384_v56 = vpop.xlane.xlu1 %383  ;;  %v408_v57 = vpop.xlane.xlu0 %407 }
 0x1b3   : > { %862 = vrcp.f32 %v384_v56 }
 0x1b4   : > { %864 = vlog2.f32 %v408_v57 }
 0x1b6   : > { %v433_v58 = vpop.xlane.xlu1 %432  ;;  %v460_v59 = vpop.xlane.xlu0 %459 }
 0x1b7   : > { %866 = vlog2.f32 %v433_v58 }
 0x1b8   : > { %868 = vlog2.f32 %v460_v59  ;;  %v510_v59 = vld [vmem:[%s1322_s29] sm:$0x3] }
 0x1b9   : > { %v861_v60 = vpop.eup %860 }
 0x1ba   : > { %v347_v61 = vmul.f32 %v861_v60, %v345_v55  ;;  %v485_v63 = vpop.xlane.xlu1 %484  ;;  %v515_v55 = vcombine.low %v511_v52, %v512_v53 }
 0x1bb   : > { %870 = vlog2.f32 %v485_v63 }
 0x1bc   : > { %v348_v0 = vsub.f32 2.0, %v347_v61 }
 0x1bd   : > { %v863_v1 = vpop.eup %862 }
 0x1be   : > { %v386_v3 = vmul.f32 %v863_v1, %v384_v56  ;;  %v865_v5 = vpop.eup %864  ;;  %v349_v6 = vmul.f32 %v861_v60, %v348_v0 }
 0x1bf   : > { %v410_v18 = vmul.f32 0.6931472, %v865_v5 }
 0x1c0   : > { %v387_v9 = vsub.f32 2.0, %v386_v3  ;;  %v350_v20 = vmul.f32 %v841_v39, %v349_v6  ;;  %v351_v22 = vmul.f32 %v843_v40, %v349_v6 }
 0x1c1   : > { %v867_v13 = vpop.eup %866  ;;  %v411_v29 = vsub.f32 %v1358_v7, %v410_v18  ;;  %v412_v30 = vsub.f32 %v1361_v8, %v410_v18 }
 0x1c2   : > { %v869_v15 = vpop.eup %868  ;;  %v388_v16 = vmul.f32 %v863_v1, %v387_v9  ;;  %v435_v19 = vmul.f32 0.6931472, %v867_v13 }
 0x1c3   : > { %v462_v24 = vmul.f32 0.6931472, %v869_v15 }
 0x1c4   : > { %v389_v11 = vmul.f32 %v849_v44, %v388_v16  ;;  %v390_v23 = vmul.f32 %v851_v46, %v388_v16  ;;  %v436_v31 = vsub.f32 %v1364_v14, %v435_v19  ;;  %v437_v32 = vsub.f32 %v1367_v17, %v435_v19 }
 0x1c5   : > { %v871_v12 = vpop.eup %870  ;;  %v463_v39 = vsub.f32 %v1377_v33, %v462_v24  ;;  %v464_v40 = vsub.f32 %v1379_v34, %v462_v24 }
 0x1c6   : > { %v391_v26 = vadd.f32 %v389_v11, %v350_v20  ;;  %v392_v27 = vadd.f32 %v390_v23, %v351_v22  ;;  %v487_v28 = vmul.f32 0.6931472, %v871_v12 }
 0x1c8   : > { %v438_v35 = vsub.f32 %v391_v26, %v389_v11  ;;  %v439_v36 = vsub.f32 %v392_v27, %v390_v23  ;;  %v413_v37 = vsub.f32 %v391_v26, %v350_v20  ;;  %v414_v38 = vsub.f32 %v392_v27, %v351_v22 }
 0x1c9   : > { %v488_v41 = vsub.f32 %v1371_v25, %v487_v28  ;;  %v489_v42 = vsub.f32 %v1373_v21, %v487_v28  ;;  %v465_v45 = vmul.f32 %v463_v39, %v391_v26  ;;  %v466_v14 = vmul.f32 %v464_v40, %v392_v27 }
 0x1ca   : > { %v415_v43 = vmul.f32 %v413_v37, %v411_v29  ;;  %v416_v7 = vmul.f32 %v414_v38, %v412_v30  ;;  %v440_v44 = vmul.f32 %v438_v35, %v436_v31  ;;  %v441_v8 = vmul.f32 %v439_v36, %v437_v32 }
 0x1cb   : > { %v490_v49 = vmul.f32 %v488_v41, %v391_v26  ;;  %v491_v50 = vmul.f32 %v489_v42, %v392_v27  ;;  %v1066_v21 = vmov 1966171168  }
 0x1cc   : > { %v442_v46 = vadd.f32 %v440_v44, %v415_v43  ;;  %v443_v17 = vadd.f32 %v441_v8, %v416_v7  ;;  %v517_v51 = vunpack.c.l.s4 %v1066_v21 }
 0x1ce   : > { %v467_v47 = vadd.f32 %v465_v45, %v442_v46  ;;  %v468_v48 = vadd.f32 %v466_v14, %v443_v17  ;;  %v518_v54 = vunpack.c.0.s8 %v517_v51 }
 0x1d0   : > { %v492_v33 = vadd.f32 %v490_v49, %v467_v47  ;;  %v493_v34 = vadd.f32 %v491_v50, %v468_v48  ;;  %v521_v56 = vsub.s32 %v518_v54, %v1333_v10 }
 0x1d2   : > { %v494_v25 = vadd.f32 %v493_v34, %v492_v33  ;;  %v522_v57 = vrot.slane %v515_v55, %v521_v56 }
 0x1d4   : > { %495 = vadd.xlane.f32.xlu0 %v494_v25  ;;  %v529_v58 = vrot.slane %v522_v57, %v521_v56 }
 0x1d6   : > { %v531_v60 = vadd.f32 %v529_v58, %v510_v59 }
 0x1d8   : > { %536 = vst.msk [vmem:[%s1322_s29] sm:$0x3] %vm534_vm2, %v531_v60 }
 0x1d9   : > { %945 = shalt.err (!%p942_p0)
}
 0x1da   : > { %s946_s22 = scalar_lea.hbm %s1402_s24, 32  ;;  %s950_s18 = scalar_lea.hbm %s1466_s4, 64 }
 0x1db   : > { %p947_p6 = scmp.ne.s32.totalorder %s1402_s24, %s946_s22  ;;  %p951_p7 = scmp.lt.u32.totalorder %s1402_s24, %s1466_s4 }
 0x1dc   : > { %p952_p3 = scmp.lt.u32.totalorder %s950_s18, %s946_s22  ;;  %p954_p4 = scmp.lt.u32.totalorder %s946_s22, %s1402_s24 }
 0x1dd   : > { %p948_p9 = pnand %p947_p6, %p1494_p1 }
 0x1de   : > { %p953_p8 = por %p952_p3, %p951_p7 }
 0x1df   : > { %p949_p5 = pneg %p948_p9 }
 0x1e0   : > { %p955_p11 = por %p954_p4, %p953_p8 }
 0x1e2   : > { %p956_p13 = pnand %p955_p11, %p949_p5 }
 0x1e4   : > { %959 = shalt.err (!%p956_p13)
}
 0x1e5   : > { %728 = dma.vmem_to_hbm [thread:$0]  (%p1494_p1), %s559_s0, 32, %s1402_s24, %s541_s7   ;;  %v504_v1 = vld [vmem:[%s1320_s27] sm:$0x1]  ;;  %vm508_vm3 = vcmask 0  }
 0x261   : > { %v496_v4 = vpop.xlane.xlu0 %495 }
 0x262   : > { %v497_v10 = vrot.slane %v496_v4, 4 }
 0x264   : > { %v498_v62 = vadd.f32 %v497_v10, %v496_v4 }
 0x266   : > { %v499_v2 = vrot.slane %v498_v62, 2 }
 0x268   : > { %v500_v61 = vadd.f32 %v499_v2, %v498_v62 }
 0x26a   : > { %v501_v63 = vrot.slane %v500_v61, 1 }
 0x26c   : > { %v502_v0 = vadd.f32 %v501_v63, %v500_v61 }
 0x26e   : > { %722 = vpush %v502_v0 }
 0x29f   : > { %s723_s29 = spop %722 }
 0x2a0   : > { %v505_v3 = vstv %s723_s29 }
 0x2a1   : > { %v506_v5 = vmul.f32 -0.0052083335, %v505_v3 }
 0x2a3   : > { %v507_v6 = vadd.f32 %v506_v5, %v504_v1 }
 0x2a5   : > { %509 = vst.msk [vmem:[%s1320_s27] sm:$0x1] %vm508_vm3, %v507_v6 }
 0x2a6 PF: > { %p742_p1 = scmp.ge.s32.totalorder %s1058_s25, 2  ;;  %s576_s30 = sand.u32 1, %s1018_s15  }
 0x2a7   : > { %p1495_p12 = scmp.ne.s32.totalorder %s1486_s11, 0  ;;  %s577_s21 = scalar_lea.sflag [#allocation4], %s576_s30 }
 0x2a9   : > { %p738_p2 = pnand %p742_p1, %p1495_p12 }
 0x2ab   : > { %1013 = dma.done.wait (!%p738_p2), %s577_s21, 32  }
 0x2ac   : > { %1015 = vsyncadd (!%p738_p2), %s577_s21, 4294967264  ;;  %s24_s25 = sadd.s32 1, %s1058_s25   ;;  %s1496_s8 = sld [smem:[#allocation16_spill]] }
 0x2ad   : > { %p21_p10 = scmp.ge.s32.totalorder %s24_s25, 6   ;;  %s1497_s26 = sld [smem:[#allocation11_spill]] }
 0x2ae   : > { %s1498_s20 = sld [smem:[#allocation17_spill]]  ;;  %s1499_s21 = sld [smem:[#allocation12_spill]] }
 0x2af   : > { %s1500_s22 = sld [smem:[#allocation13_spill]]  ;;  %s1501_s23 = sld [smem:[#allocation14_spill]] }
 0x2b0   : > { %s1502_s24 = sld [smem:[#allocation15_spill]]  ;;  %s1503_s15 = smov %s1022_s16 }
 0x2b1   : > { %s1504_s16 = smov %s1026_s17  ;;  %s1506_s18 = smov %s1034_s19 }
 0x2b2   : > { %s1505_s17 = smov %s1496_s8  ;;  %23 = sbr.rel (!%p21_p10) target bundleno = 13 (0xd), region = 110 }
 0x2b3   : > { %s1507_s19 = smov %s1497_s26 }
 0x2b9   :  { %582 = vsyncpa [#allocation3], 1 }
 0x2ba   :  { %584 = vsyncpa [#allocation3 + $0x1], 1 }
 0x2bb   :  { %585 = vsyncpa [#allocation6], 1 }
 0x2bc   :  { %587 = vsyncpa [#allocation6 + $0x1], 1 }
 0x2bd   :  { %588 = vsyncpa [#allocation4], 1 }
 0x2be   :  { %590 = vsyncpa [#allocation4 + $0x1], 1 }

</bundles_post_ra>
